<compile_context>
chip_gen: v5e
topology: v5e:2x2
jax: 0.10.0
libtpu: 0.0.40
codegen_flags: <defaults>
</compile_context>

<pallas_src>
import functools

import jax
import jax.numpy as jnp
from jax.experimental import pallas as pl
from jax.experimental.pallas import tpu as pltpu


def _head_kernel(x_ref, w_ref, b_ref, o_ref, *, activate):
    # x_ref: (C_in, TCOLS)   w_ref: (C_out, C_in)   b_ref: (C_out, 1)
    # o_ref: (C_out, TCOLS)
    # 1x1 conv == channel-major matmul on the MXU; accumulate in f32.
    acc = jnp.dot(w_ref[...], x_ref[...], preferred_element_type=jnp.float32)
    acc = acc + b_ref[...]  # (C_out, 1) broadcast over the pixel lanes
    if activate == "softmax":
        # Softmax over the channel axis (axis 0, C_out sublanes) — matches
        # PyTorch nn.Softmax(dim=1) on NCHW.  Exact divide so probabilities
        # sum to 1 (denominator is only (1, TCOLS), cost is negligible).
        m = jnp.max(acc, axis=0, keepdims=True)
        e = jnp.exp(acc - m)
        denom = jnp.sum(e, axis=0, keepdims=True)
        o_ref[...] = (e / denom).astype(o_ref.dtype)
    else:  # sigmoid
        o_ref[...] = jax.nn.sigmoid(acc).astype(o_ref.dtype)


def _round_up(x, m):
    return ((x + m - 1) // m) * m


def _choose_tile(n, cols, c_in, c_out, in_itemsize, out_itemsize, max_tcols):
    """Pick the column tile and (optional) VMEM limit for this generation."""
    # Physical VMEM per TensorCore (v7x: 64 MiB, v5e/v6e: 128 MiB).
    try:
        phys = int(pltpu.get_tpu_info().vmem_capacity_bytes)
    except Exception:  # pragma: no cover - conservative fallback
        phys = 64 << 20
    # Double-buffered streamed input + double-buffered output per grid step.
    bytes_per_col = 2 * (c_in * in_itemsize) + 2 * (c_out * out_itemsize)
    budget = min(int(phys * 0.4), 48 << 20)
    fit = max(128, (budget // bytes_per_col) // 128 * 128)
    tcols = min(cols, fit, max_tcols)
    if tcols < cols:
        tcols = _round_up(tcols, 128)  # partial final block is masked by Pallas

    # Guarantee >= 2 parallel grid steps so both v7x TensorCores get work.
    if n * pl.cdiv(cols, tcols) < 2 and cols > 128:
        tcols = max(128, _round_up(pl.cdiv(cols, 2), 128))

    # Only raise the scoped-VMEM limit when the tile actually needs it
    # (14 MiB is below every generation's default scoped limit).
    needed = bytes_per_col * tcols + (1 << 20)
    vmem_limit = None
    if needed > (14 << 20):
        vmem_limit = min(needed + (8 << 20), int(phys * 0.9))
    return tcols, vmem_limit


@functools.partial(jax.jit, static_argnames=("activate", "max_tcols"))
def linear_head_forward(x_nchw, weight, bias, *, activate="softmax",
                        max_tcols=32768):
    """x_nchw: (N, C_in, H, W); weight: (C_out, C_in); bias: (C_out,)."""
    n, c_in, h, w = x_nchw.shape
    c_out = weight.shape[0]
    cols = h * w

    # Free row-major reshape: channels stay the second axis, pixels become the
    # lane axis.  No transpose and NO dtype cast in the wrapper (a standalone
    # cast would add an extra HBM pass over the dominant tensor).
    x3 = x_nchw.reshape(n, c_in, cols)
    w_mat = weight.astype(jnp.float32)            # tiny, cost-free
    b_mat = bias.reshape(c_out, 1).astype(jnp.float32)

    in_itemsize = jnp.dtype(x3.dtype).itemsize
    out_itemsize = jnp.dtype(x_nchw.dtype).itemsize
    tcols, vmem_limit = _choose_tile(n, cols, c_in, c_out,
                                     in_itemsize, out_itemsize, max_tcols)
    grid = (n, pl.cdiv(cols, tcols))

    compiler_params = pltpu.CompilerParams(
        dimension_semantics=("parallel", "parallel"),
        vmem_limit_bytes=vmem_limit)

    out = pl.pallas_call(
        functools.partial(_head_kernel, activate=activate),
        out_shape=jax.ShapeDtypeStruct((n, c_out, cols), x_nchw.dtype),
        grid_spec=pltpu.PrefetchScalarGridSpec(
            num_scalar_prefetch=0,
            grid=grid,
            in_specs=[
                # Batch dim squeezed (None); pixel tiles along the lane axis.
                pl.BlockSpec((None, c_in, tcols), lambda b, j: (b, 0, j)),
                # Weight & bias: constant index_map -> VMEM-resident across
                # the whole grid (no per-step re-DMA).
                pl.BlockSpec((c_out, c_in), lambda b, j: (0, 0)),
                pl.BlockSpec((c_out, 1), lambda b, j: (0, 0)),
            ],
            out_specs=pl.BlockSpec((None, c_out, tcols), lambda b, j: (b, 0, j)),
        ),
        compiler_params=compiler_params,
    )(x3, w_mat, b_mat)

    # Free reshape back to NCHW — already channel-major.
    return out.reshape(n, c_out, h, w)


class LinearHeadPallas:
    """Mirror of networks/head.py::LinearHead."""

    def __init__(self, out_channels=(1, 1, 8), activate="softmax",
                 in_channels=(64, 64, 128, 256, 512), key=None):
        assert activate in ("softmax", "sigmoid")
        self.activate = activate
        c_in = in_channels[2]
        c_out = out_channels[2]
        if key is None:
            key = jax.random.PRNGKey(0)
        kw, kb = jax.random.split(key)
        # Conv2d(c_in, c_out, 1, bias=True): weight (C_out, C_in, 1, 1) stored
        # as (C_out, C_in); bias (C_out,).  Uniform(-1/sqrt(c_in), 1/sqrt(c_in)).
        bound = 1.0 / float(c_in) ** 0.5
        self.weight = jax.random.uniform(kw, (c_out, c_in), jnp.float32,
                                         -bound, bound)
        self.bias = jax.random.uniform(kb, (c_out,), jnp.float32, -bound, bound)

    def __call__(self, representation):
        outputs = {}
        outputs[("output", 0)] = linear_head_forward(
            representation, self.weight, self.bias, activate=self.activate)
        return outputs


if __name__ == "__main__":
    key = jax.random.PRNGKey(0)
    k_x, k_p = jax.random.split(key)

    # Input consistent with the module: in_channels[2] = 128 channels, NCHW.
    N, C_IN, H, W = 2, 128, 16, 16
    x = jax.random.normal(k_x, (N, C_IN, H, W), jnp.float32)

    head = LinearHeadPallas(out_channels=(1, 1, 8), activate="softmax",
                            in_channels=(64, 64, 128, 256, 512), key=k_p)
    outputs = head(x)
    out = outputs[("output", 0)]
    jax.block_until_ready(out)

    # Reference check in plain JAX (1x1 conv + softmax over the channel dim).
    ref = jnp.einsum("nchw,oc->nohw", x, head.weight) + head.bias[None, :, None, None]
    ref = jax.nn.softmax(ref, axis=1)
    assert out.shape == (N, 8, H, W)
    assert jnp.allclose(out, ref, atol=1e-5, rtol=1e-5)
    # Probabilities sum to 1 per pixel (exact normalization in-kernel).
    assert jnp.allclose(jnp.sum(out, axis=1), 1.0, atol=1e-5)

    print("KERNEL_OK")
</pallas_src>

<mosaic_0001>
module attributes {stable_mosaic.version = 11 : i64} {
  func.func @_head_kernel(%arg0: i32, %arg1: i32, %arg2: memref<1x128x256xf32, #tpu.memory_space<vmem>>, %arg3: memref<8x128xf32, #tpu.memory_space<vmem>>, %arg4: memref<8x1xf32, #tpu.memory_space<vmem>>, %arg5: memref<1x8x256xf32, #tpu.memory_space<vmem>>) attributes {dimension_semantics = [#tpu.dimension_semantics<parallel>, #tpu.dimension_semantics<parallel>], iteration_bounds = array<i64: 2, 1>, scalar_prefetch = 0 : i64, scratch_operands = 0 : i64, tpu.core_type = #tpu.core_type<tc>, window_params = [{transform_indices = @transform_0, window_bounds = array<i64: 1, 128, 256>}, {pipeline_mode = #tpu.pipeline_mode<synchronous>, transform_indices = @transform_1, window_bounds = array<i64: 8, 128>}, {pipeline_mode = #tpu.pipeline_mode<synchronous>, transform_indices = @transform_2, window_bounds = array<i64: 8, 1>}, {transform_indices = @transform_3, window_bounds = array<i64: 1, 8, 256>}]} {
    %c0 = arith.constant 0 : index
    %c0_0 = arith.constant 0 : index
    %0 = vector.load %arg3[%c0, %c0_0] : memref<8x128xf32, #tpu.memory_space<vmem>>, vector<8x128xf32>
    %c0_1 = arith.constant 0 : index
    %c0_2 = arith.constant 0 : index
    %c0_3 = arith.constant 0 : index
    %1 = vector.load %arg2[%c0_1, %c0_2, %c0_3] : memref<1x128x256xf32, #tpu.memory_space<vmem>>, vector<1x128x256xf32>
    %2 = vector.shape_cast %1 : vector<1x128x256xf32> to vector<128x256xf32>
    %cst = arith.constant dense<0.000000e+00> : vector<8x256xf32>
    %3 = tpu.matmul %0, %2, %cst {dimension_numbers = #tpu.dot_dimension_numbers<[1], [0], [0], [1], [0, 0, 1, 1], [], []>} : vector<8x128xf32>, vector<128x256xf32>, vector<8x256xf32> -> vector<8x256xf32>
    %c0_4 = arith.constant 0 : index
    %c0_5 = arith.constant 0 : index
    %4 = vector.load %arg4[%c0_4, %c0_5] : memref<8x1xf32, #tpu.memory_space<vmem>>, vector<8x1xf32>
    %5 = vector.broadcast %4 : vector<8x1xf32> to vector<8x256xf32>
    %6 = arith.addf %3, %5 : vector<8x256xf32>
    %cst_6 = arith.constant dense<0xFF800000> : vector<256xf32>
    %7 = vector.multi_reduction <maximumf>, %6, %cst_6 [0] : vector<8x256xf32> to vector<256xf32>
    %8 = vector.shape_cast %7 : vector<256xf32> to vector<1x256xf32>
    %9 = vector.broadcast %8 : vector<1x256xf32> to vector<8x256xf32>
    %10 = arith.subf %6, %9 : vector<8x256xf32>
    %11 = math.exp %10 : vector<8x256xf32>
    %cst_7 = arith.constant dense<0.000000e+00> : vector<256xf32>
    %12 = vector.multi_reduction <add>, %11, %cst_7 [0] : vector<8x256xf32> to vector<256xf32>
    %13 = vector.shape_cast %12 : vector<256xf32> to vector<1x256xf32>
    %14 = vector.broadcast %13 : vector<1x256xf32> to vector<8x256xf32>
    %15 = arith.divf %11, %14 : vector<8x256xf32>
    %c0_8 = arith.constant 0 : index
    %c0_9 = arith.constant 0 : index
    %c0_10 = arith.constant 0 : index
    %16 = vector.load %arg5[%c0_8, %c0_9, %c0_10] : memref<1x8x256xf32, #tpu.memory_space<vmem>>, vector<1x8x256xf32>
    %17 = vector.shape_cast %16 : vector<1x8x256xf32> to vector<8x256xf32>
    %18 = vector.shape_cast %15 : vector<8x256xf32> to vector<1x8x256xf32>
    tpu.vector_store %arg5[%c0_8, %c0_9, %c0_10], %18 {strides = array<i32>} : memref<1x8x256xf32, #tpu.memory_space<vmem>>, vector<1x8x256xf32>,
    return
  }
  func.func @transform_0(%arg0: i32, %arg1: i32) -> (i32, i32, i32) {
    %c0_i32 = arith.constant 0 : i32
    %c0_i32_0 = arith.constant 0 : i32
    return %arg0, %c0_i32, %arg1 : i32, i32, i32
  }
  func.func @transform_1(%arg0: i32, %arg1: i32) -> (i32, i32) {
    %c0_i32 = arith.constant 0 : i32
    %c0_i32_0 = arith.constant 0 : i32
    %c0_i32_1 = arith.constant 0 : i32
    return %c0_i32, %c0_i32_0 : i32, i32
  }
  func.func @transform_2(%arg0: i32, %arg1: i32) -> (i32, i32) {
    %c0_i32 = arith.constant 0 : i32
    %c0_i32_0 = arith.constant 0 : i32
    %c0_i32_1 = arith.constant 0 : i32
    return %c0_i32, %c0_i32_0 : i32, i32
  }
  func.func @transform_3(%arg0: i32, %arg1: i32) -> (i32, i32, i32) {
    %c0_i32 = arith.constant 0 : i32
    %c0_i32_0 = arith.constant 0 : i32
    return %arg0, %c0_i32, %arg1 : i32, i32, i32
  }
}

</mosaic_0001>

<bundles_post_ra>
// kernel: linear_head_forward.1
= control target key start
LH: loop header
LB: loop body
LE: loop exit
PB: predicated region body
PF: predicated region fallthrough
CT: control target
= control target key end

     0   :  { %s530_s12 = smov 0   ;;  %s532_s13 = smov 0   ;;  %s607_s0 = inlined_call_operand.vmem [shape: f32[2,128,256], index: 0, kind: input, shape index: {}]   ;;  %s608_s1 = inlined_call_operand.vmem [shape: f32[8,128], index: 1, kind: input, shape index: {}]   ;;  %s609_s2 = inlined_call_operand.vmem [shape: f32[8,1], index: 2, kind: input, shape index: {}]   ;;  %s610_s3 = inlined_call_operand.vmem [shape: f32[2,8,256], index: 3, kind: output, shape index: {}]  }
   0x1   :  { %s534_s14 = smov 0  }
   0x2 LB: > { %s25_s15 = sadd.s32 1, %s503_s13  ;;  %p442_p0 = scmp.ge.s32.totalorder %s507_s14, 1  ;;  %s507_s14 = sphi %s534_s14, %s13_s14   ;;  %s503_s13 = sphi %s532_s13, %s612_s13   ;;  %s499_s12 = sphi %s530_s12, %s611_s12  }
   0x3   : > { %p27_p1 = scmp.ge.s32.totalorder %s25_s15, 2  ;;  %p158_p2 = scmp.lt.s32.totalorder %s507_s14, 3 }
   0x5   : > { %s614_s15 = smov (%p27_p1, %s25_s15), 0  ;;  %p159_p3 = pnand %p442_p0, %p158_p2 }
   0x6   : > { %p191_p4 = scmp.lt.s32.totalorder (!%p159_p3), %s499_s12, 1 }
   0x7   : > { %162 = sbr.rel (%p159_p3) target bundleno = 231 (0xe7), region = 32 }
   0xc   : > { %s616_s12 = smov (!%p191_p4, %s499_s12), 1  ;;  %v509_v6 = vmov 0   ;;  %v243_v15 = vld [vmem:[%s609_s2] sm:$0xff] }
   0xd   : > { %s449_s16 = sshll.u32 %s616_s12, 8  ;;  %476 = vset.pattern.permute.xlu0 %v509_v6  ;;  %v210_v34 = vld [vmem:[%s608_s1] sm:$0xff]  ;;  %s450_s24 = sshll.u32 %s616_s12, 4 }
   0xe   : > { %s554_s19 = scalar_lea.vmem %s607_s0, %s449_s16  ;;  %246 = vperm.xlu0 %476, %v243_v15   ;;  %s208_s27 = scalar_lea.vmem %s610_s3, %s450_s24 }
   0xf   : > { %v241_v0 = vld [vmem:[%s554_s19 + $0xf0] sm:$0xff]  ;;  %v242_v1 = vld [vmem:[%s554_s19 + $0xf8] sm:$0xff]  ;;  %v239_v2 = vld [vmem:[%s554_s19 + $0xe0] sm:$0xff] }
  0x10   : > { %249 = vmatpush.msra.mxu0 %v241_v0  ;;  %269 = vmatpush.msra.mxu1 %v242_v1  ;;  %v240_v3 = vld [vmem:[%s554_s19 + $0xe8] sm:$0xff]  ;;  %v237_v4 = vld [vmem:[%s554_s19 + $0xd0] sm:$0xff]  ;;  %v238_v5 = vld [vmem:[%s554_s19 + $0xd8] sm:$0xff] }
  0x11   : > { %v235_v7 = vld [vmem:[%s554_s19 + $0xc0] sm:$0xff]  ;;  %v236_v8 = vld [vmem:[%s554_s19 + $0xc8] sm:$0xff]  ;;  %v233_v9 = vld [vmem:[%s554_s19 + $0xb0] sm:$0xff] }
  0x12   : > { %250 = vmatpush.msra.mxu0 %v239_v2  ;;  %270 = vmatpush.msra.mxu1 %v240_v3  ;;  %v234_v10 = vld [vmem:[%s554_s19 + $0xb8] sm:$0xff]  ;;  %v231_v11 = vld [vmem:[%s554_s19 + $0xa0] sm:$0xff]  ;;  %v232_v12 = vld [vmem:[%s554_s19 + $0xa8] sm:$0xff] }
  0x13   : > { %v229_v13 = vld [vmem:[%s554_s19 + $0x90] sm:$0xff]  ;;  %v230_v14 = vld [vmem:[%s554_s19 + $0x98] sm:$0xff]  ;;  %v227_v16 = vld [vmem:[%s554_s19 + $0x80] sm:$0xff] }
  0x14   : > { %251 = vmatpush.msra.mxu0 %v237_v4  ;;  %271 = vmatpush.msra.mxu1 %v238_v5  ;;  %v228_v17 = vld [vmem:[%s554_s19 + $0x88] sm:$0xff]  ;;  %v225_v18 = vld [vmem:[%s554_s19 + $0x70] sm:$0xff]  ;;  %v226_v19 = vld [vmem:[%s554_s19 + $0x78] sm:$0xff] }
  0x15   : > { %v223_v20 = vld [vmem:[%s554_s19 + $0x60] sm:$0xff]  ;;  %v224_v21 = vld [vmem:[%s554_s19 + $0x68] sm:$0xff]  ;;  %v221_v22 = vld [vmem:[%s554_s19 + $0x50] sm:$0xff] }
  0x16   : > { %252 = vmatpush.msra.mxu0 %v235_v7  ;;  %272 = vmatpush.msra.mxu1 %v236_v8  ;;  %v222_v23 = vld [vmem:[%s554_s19 + $0x58] sm:$0xff]  ;;  %v219_v24 = vld [vmem:[%s554_s19 + $0x40] sm:$0xff]  ;;  %v220_v25 = vld [vmem:[%s554_s19 + $0x48] sm:$0xff] }
  0x17   : > { %v217_v26 = vld [vmem:[%s554_s19 + $0x30] sm:$0xff]  ;;  %v218_v27 = vld [vmem:[%s554_s19 + $0x38] sm:$0xff]  ;;  %v215_v28 = vld [vmem:[%s554_s19 + $0x20] sm:$0xff] }
  0x18   : > { %253 = vmatpush.msra.mxu0 %v233_v9  ;;  %273 = vmatpush.msra.mxu1 %v234_v10  ;;  %v216_v29 = vld [vmem:[%s554_s19 + $0x28] sm:$0xff]  ;;  %v213_v30 = vld [vmem:[%s554_s19 + $0x10] sm:$0xff]  ;;  %v214_v31 = vld [vmem:[%s554_s19 + $0x18] sm:$0xff] }
  0x19   : > { %v211_v32 = vld [vmem:[%s554_s19] sm:$0xff]  ;;  %v212_v33 = vld [vmem:[%s554_s19 + $0x8] sm:$0xff] }
  0x1a   : > { %254 = vmatpush.msra.mxu0 %v231_v11  ;;  %274 = vmatpush.msra.mxu1 %v232_v12 }
  0x1c   : > { %255 = vmatpush.msra.mxu0 %v229_v13  ;;  %275 = vmatpush.msra.mxu1 %v230_v14 }
  0x1e   : > { %256 = vmatpush.msra.mxu0 %v227_v16  ;;  %276 = vmatpush.msra.mxu1 %v228_v17 }
  0x20   : > { %257 = vmatpush.msra.mxu0 %v225_v18  ;;  %277 = vmatpush.msra.mxu1 %v226_v19 }
  0x22   : > { %258 = vmatpush.msra.mxu0 %v223_v20  ;;  %278 = vmatpush.msra.mxu1 %v224_v21 }
  0x24   : > { %259 = vmatpush.msra.mxu0 %v221_v22  ;;  %279 = vmatpush.msra.mxu1 %v222_v23 }
  0x26   : > { %260 = vmatpush.msra.mxu0 %v219_v24  ;;  %280 = vmatpush.msra.mxu1 %v220_v25 }
  0x28   : > { %261 = vmatpush.msra.mxu0 %v217_v26  ;;  %281 = vmatpush.msra.mxu1 %v218_v27 }
  0x2a   : > { %262 = vmatpush.msra.mxu0 %v215_v28  ;;  %282 = vmatpush.msra.mxu1 %v216_v29 }
  0x2c   : > { %263 = vmatpush.msra.mxu0 %v213_v30  ;;  %283 = vmatpush.msra.mxu1 %v214_v31 }
  0x2e   : > { %264 = vmatpush.msra.mxu0 %v211_v32  ;;  %284 = vmatpush.msra.mxu1 %v212_v33 }
  0x2f   : > { %265 = vmatmul.f32.vlgmr.msra.gmra.mxu0 %v210_v34  ;;  %285 = vmatmul.f32.vlgmr.msra.gmra.mxu1 %v210_v34 }
  0x80   : > { %v247_v35 = vpop.permute.xlu0 %246 }
  0xac   : > { %v266_v36 = vpop.f32.mrf.mxu0  ;;  %v286_v37 = vpop.f32.mrf.mxu1 }
  0xad   : > { %v267_v38 = vadd.f32 %v266_v36, %v247_v35  ;;  %v287_v39 = vadd.f32 %v286_v37, %v247_v35 }
  0xaf   : > { %v289_v40 = vrot.slane %v267_v38, 4  ;;  %v295_v41 = vrot.slane %v287_v39, 4 }
  0xb1   : > { %v290_v42 = vmax.f32 %v267_v38, %v289_v40  ;;  %v296_v43 = vmax.f32 %v287_v39, %v295_v41 }
  0xb3   : > { %v291_v44 = vrot.slane %v290_v42, 2  ;;  %v297_v45 = vrot.slane %v296_v43, 2 }
  0xb5   : > { %v292_v46 = vmax.f32 %v290_v42, %v291_v44  ;;  %v298_v47 = vmax.f32 %v296_v43, %v297_v45 }
  0xb7   : > { %v293_v48 = vrot.slane %v292_v46, 1  ;;  %v299_v49 = vrot.slane %v298_v47, 1 }
  0xb9   : > { %v294_v50 = vmax.f32 %v292_v46, %v293_v48  ;;  %v300_v51 = vmax.f32 %v298_v47, %v299_v49 }
  0xbb   : > { %v301_v52 = vsub.f32 %v267_v38, %v294_v50  ;;  %v302_v53 = vsub.f32 %v287_v39, %v300_v51 }
  0xbd   : > { %v303_v54 = vmul.f32 1.442695, %v301_v52  ;;  %v305_v55 = vmul.f32 1.442695, %v302_v53 }
  0xbf   : > { %477 = vpow2.f32 %v303_v54 }
  0xc0   : > { %479 = vpow2.f32 %v305_v55 }
  0xc5   : > { %v478_v56 = vpop.eup %477 }
  0xc6   : > { %v480_v57 = vpop.eup %479  ;;  %v307_v58 = vrot.slane %v478_v56, 4 }
  0xc7   : > { %v313_v59 = vrot.slane %v480_v57, 4 }
  0xc8   : > { %v308_v60 = vadd.f32 %v478_v56, %v307_v58 }
  0xc9   : > { %v314_v61 = vadd.f32 %v480_v57, %v313_v59 }
  0xca   : > { %v309_v62 = vrot.slane %v308_v60, 2 }
  0xcb   : > { %v315_v63 = vrot.slane %v314_v61, 2 }
  0xcc   : > { %v310_v0 = vadd.f32 %v309_v62, %v308_v60 }
  0xcd   : > { %v316_v1 = vadd.f32 %v315_v63, %v314_v61 }
  0xce   : > { %v311_v2 = vrot.slane %v310_v0, 1 }
  0xcf   : > { %v317_v3 = vrot.slane %v316_v1, 1 }
  0xd0   : > { %v312_v4 = vadd.f32 %v311_v2, %v310_v0 }
  0xd1   : > { %v318_v5 = vadd.f32 %v317_v3, %v316_v1 }
  0xd2   : > { %481 = vrcp.f32 %v312_v4  ;;  %v330_v11 = vand.u32 2147483648, %v312_v4  ;;  %v328_v14 = vand.u32 2147483647, %v312_v4  ;;  %vm324_vm2 = vweird.f32 %v312_v4 }
  0xd3   : > { %483 = vrcp.f32 %v318_v5  ;;  %v345_v15 = vand.u32 2147483648, %v318_v5  ;;  %v343_v17 = vand.u32 2147483647, %v318_v5  ;;  %vm339_vm4 = vweird.f32 %v318_v5 }
  0xd4   : > { %v331_v19 = vor.u32 1.1754944e-38, %v330_v11  ;;  %vm329_vm5 = vcmp.eq.f32.partialorder %v328_v14, 8.507059e+37 }
  0xd5   : > { %v346_v22 = vor.u32 1.1754944e-38, %v345_v15  ;;  %vm344_vm7 = vcmp.eq.f32.partialorder %v343_v17, 8.507059e+37 }
  0xd8   : > { %v482_v6 = vpop.eup %481 }
  0xd9   : > { %v484_v7 = vpop.eup %483  ;;  %v320_v8 = vmul.f32 %v482_v6, %v312_v4  ;;  %vm325_vm0 = vweird.f32 %v482_v6 }
  0xda   : > { %v335_v9 = vmul.f32 %v484_v7, %v318_v5  ;;  %vm340_vm1 = vweird.f32 %v484_v7  ;;  %vm326_vm3 = vmor %vm324_vm2, %vm325_vm0 }
  0xdb   : > { %v321_v10 = vsub.f32 1.0, %v320_v8  ;;  %vm341_vm6 = vmor %vm339_vm4, %vm340_vm1 }
  0xdc   : > { %v336_v12 = vsub.f32 1.0, %v335_v9 }
  0xdd   : > { %v322_v13 = vmul.f32 %v482_v6, %v321_v10 }
  0xde   : > { %v337_v16 = vmul.f32 %v484_v7, %v336_v12 }
  0xdf   : > { %v323_v18 = vadd.f32 %v482_v6, %v322_v13 }
  0xe0   : > { %v338_v20 = vadd.f32 %v484_v7, %v337_v16 }
  0xe1   : > { %v327_v21 = vsel %vm326_vm3, %v482_v6, %v323_v18 }
  0xe2   : > { %v332_v23 = vsel %vm329_vm5, %v331_v19, %v327_v21  ;;  %v342_v24 = vsel %vm341_vm6, %v484_v7, %v338_v20 }
  0xe3   : > { %v333_v25 = vmul.f32 %v478_v56, %v332_v23  ;;  %v347_v26 = vsel %vm344_vm7, %v346_v22, %v342_v24 }
  0xe4   : > { %v348_v27 = vmul.f32 %v480_v57, %v347_v26 }
  0xe5   : > { %349 = vst [vmem:[%s208_s27] sm:$0xff] %v333_v25 }
  0xe6   : > { %350 = vst [vmem:[%s208_s27 + $0x8] sm:$0xff] %v348_v27 }
  0xe7 PF: > { %s13_s14 = sadd.s32 1, %s507_s14   ;;  %s611_s12 = smov %s503_s13 }
  0xe8   : > { %p10_p5 = scmp.ge.s32.totalorder %s13_s14, 4   ;;  %s612_s13 = smov %s614_s15 }
  0xea   :  { %12 = sbr.rel (!%p10_p5) target bundleno = 2 (0x2), region = 62 }

</bundles_post_ra>
